<compile_context>
chip_gen: v6e
topology: v6e:2x2x1
jax: 0.10.0
libtpu: 0.0.40
codegen_flags: <defaults>
</compile_context>

<pallas_src>
import jax
import jax.numpy as jnp
from jax.experimental import pallas as pl
from jax.experimental.pallas import tpu as pltpu


# --------------------------------------------------------------------------
# Planning helpers
# --------------------------------------------------------------------------

def _round_up(x, m):
    return ((x + m - 1) // m) * m


def _vmem_capacity_bytes():
    """Generation-aware physical VMEM (128 MiB v5e/v6e, 64 MiB/core v7x)."""
    default = 64 * (1 << 20)                    # conservative fallback (v7x)
    get_info = getattr(pltpu, "get_tpu_info", None)
    if get_info is None:
        return default
    try:
        cap = getattr(get_info(), "vmem_capacity_bytes", None)
        return int(cap) if cap else default
    except Exception:
        return default


def _vmem_limit_bytes(need, vmem_cap):
    """Footprint +40% +4 MiB headroom, clamped to 85% of physical VMEM
    (~109 MiB on v5e/v6e's 128 MiB, ~54 MiB on v7x's 64 MiB)."""
    hi = int(0.85 * vmem_cap)
    lo = min(32 * (1 << 20), hi)
    return int(max(min(int(need * 1.4) + (4 << 20), hi), lo))


def _resident_need_bytes(N_pad, M_pad, D_pad):
    """Per-branch VMEM footprint of the fused resident path (the branch grid
    axis is pipelined, so every input/output block is double-buffered)."""
    adj = 2 * 2 * (N_pad * M_pad * 2)           # adj1 + adj2, bf16, 2 buffers
    h = 2 * N_pad * D_pad * 4                   # f32, 2 buffers
    out = 2 * N_pad * D_pad * 4                 # f32, 2 buffers
    x = N_pad * D_pad * 2                       # bf16 scratch
    t_tmp = M_pad * D_pad * 4                   # compiler temp for intermediate
    return adj + h + out + x + t_tmp


def _stream_need_bytes(T, N_pad, M_pad, D_pad):
    act = (2 * N_pad * D_pad * 2                # h (bf16, 2 pipeline buffers)
           + 2 * N_pad * D_pad * 4              # out accumulator (f32, 2 bufs)
           + N_pad * D_pad * 2                  # x scratch (bf16)
           + M_pad * D_pad * 2)                 # t scratch (bf16)
    adj = 2 * T * N_pad * 2 + 2 * T * M_pad * 2  # adjacency row tiles, 2 bufs
    return act + adj


def _plan_streaming(N, M, D_pad, vmem_cap, force_tile=None):
    """Pick the largest 512/256/128 adjacency row tile that fits the budget."""
    budget = int(0.80 * vmem_cap)
    candidates = (force_tile,) if force_tile else (512, 256, 128)
    for T in candidates:
        N_pad = _round_up(N, T)
        M_pad = _round_up(M, T)
        need = _stream_need_bytes(T, N_pad, M_pad, D_pad)
        if need <= budget:
            return T, N_pad, M_pad, need
    # TODO(synk): 2-level activation row blocking for graphs that overflow
    # VMEM even at 128-row adjacency tiles (gen-aware threshold on v7x).
    T = candidates[-1]
    N_pad = _round_up(N, T)
    M_pad = _round_up(M, T)
    return T, N_pad, M_pad, _stream_need_bytes(T, N_pad, M_pad, D_pad)


# --------------------------------------------------------------------------
# Kernels
# --------------------------------------------------------------------------

def _make_resident_kernel(n_layers):
    """Fused-branch kernel: grid=(B,); the whole branch (adjacency + h + out)
    is resident in VMEM and the layer loop is unrolled in-kernel."""

    def kernel(w_ref, h_ref, adj2_ref, adj1_ref, out_ref, x_ref):
        b = pl.program_id(0)
        h = h_ref[0]                                       # [N_pad, D_pad] f32
        x_ref[...] = h.astype(jnp.bfloat16)
        out_ref[0] = w_ref[b * n_layers] * h               # exact f32 layer-0 term
        for l in range(1, n_layers):                       # static unroll (small L)
            t = jnp.dot(adj2_ref[0], x_ref[...],
                        preferred_element_type=jnp.float32)
            xn = jnp.dot(adj1_ref[0], t.astype(jnp.bfloat16),
                         preferred_element_type=jnp.float32)
            x_ref[...] = xn.astype(jnp.bfloat16)
            out_ref[0] = out_ref[0] + w_ref[b * n_layers + l] * xn

    return kernel


def _make_streaming_kernel(n_layers, T, m_tiles, n_tiles):
    """Sequential schedule: step -> (layer, phase, row-tile).  Phase 0 fills a
    row-tile of t = adj2 @ x; phase 1 fills a row-tile of x = adj1 @ t and
    accumulates w[layer] * x into the resident output block."""
    steps_per_layer = m_tiles + n_tiles

    def kernel(w_ref, h_ref, adj2_ref, adj1_ref, out_ref, x_ref, t_ref):
        s = pl.program_id(0)
        sl = s % steps_per_layer
        layer = s // steps_per_layer + 1                   # 1 .. n_layers-1
        is_phase0 = sl < m_tiles

        @pl.when(s == 0)
        def _init():
            h = h_ref[...]                                 # bf16
            x_ref[...] = h
            out_ref[...] = w_ref[0] * h.astype(jnp.float32)

        @pl.when(is_phase0)
        def _stage_t():
            tile = jnp.minimum(sl, m_tiles - 1)
            row = pl.multiple_of(tile * T, T)
            t_tile = jnp.dot(adj2_ref[...], x_ref[...],
                             preferred_element_type=jnp.float32)
            t_ref[pl.ds(row, T), :] = t_tile.astype(jnp.bfloat16)

        @pl.when(jnp.logical_not(is_phase0))
        def _stage_x():
            tile = jnp.clip(sl - m_tiles, 0, n_tiles - 1)
            row = pl.multiple_of(tile * T, T)
            x_tile = jnp.dot(adj1_ref[...], t_ref[...],
                             preferred_element_type=jnp.float32)
            x_ref[pl.ds(row, T), :] = x_tile.astype(jnp.bfloat16)
            wl = w_ref[layer]                              # scalar SMEM read
            out_ref[pl.ds(row, T), :] = out_ref[pl.ds(row, T), :] + wl * x_tile

    return kernel


# --------------------------------------------------------------------------
# Wrappers
# --------------------------------------------------------------------------

def _propagate_resident(items, n_layers, N_pad, M_pad, D_pad, vmem_cap):
    """items: list of (idx, adj1, adj2, h, w, N, D) sharing padded shapes."""
    B = len(items)
    h_b = jnp.zeros((B, N_pad, D_pad), jnp.float32)
    adj1_b = jnp.zeros((B, N_pad, M_pad), jnp.bfloat16)
    adj2_b = jnp.zeros((B, M_pad, N_pad), jnp.bfloat16)
    w_b = jnp.zeros((B * n_layers,), jnp.float32)
    for j, (_, adj1, adj2, h, w, N, D) in enumerate(items):
        M = adj2.shape[0]
        h_b = h_b.at[j, :N, :D].set(h.astype(jnp.float32))
        adj1_b = adj1_b.at[j, :N, :M].set(adj1.astype(jnp.bfloat16))
        adj2_b = adj2_b.at[j, :M, :N].set(adj2.astype(jnp.bfloat16))
        w_b = w_b.at[j * n_layers:(j + 1) * n_layers].set(w)

    need = _resident_need_bytes(N_pad, M_pad, D_pad)
    out = pl.pallas_call(
        _make_resident_kernel(n_layers),
        out_shape=jax.ShapeDtypeStruct((B, N_pad, D_pad), jnp.float32),
        grid_spec=pltpu.PrefetchScalarGridSpec(
            num_scalar_prefetch=0,
            grid=(B,),
            in_specs=[
                pl.BlockSpec(memory_space=pltpu.MemorySpace.SMEM),     # w [B*L]
                pl.BlockSpec((1, N_pad, D_pad), lambda b: (b, 0, 0)),  # h
                pl.BlockSpec((1, M_pad, N_pad), lambda b: (b, 0, 0)),  # adj2
                pl.BlockSpec((1, N_pad, M_pad), lambda b: (b, 0, 0)),  # adj1
            ],
            out_specs=pl.BlockSpec((1, N_pad, D_pad), lambda b: (b, 0, 0)),
            scratch_shapes=[pltpu.VMEM((N_pad, D_pad), jnp.bfloat16)],  # x
        ),
        compiler_params=pltpu.CompilerParams(
            dimension_semantics=("parallel",),   # branches are independent
            vmem_limit_bytes=_vmem_limit_bytes(need, vmem_cap),
        ),
    )(w_b, h_b, adj2_b, adj1_b)

    return [out[j, :N, :D] for j, (_, _, _, _, _, N, D) in enumerate(items)]


def _propagate_streaming(adj1, adj2, h, w, n_layers, vmem_cap, force_tile=None):
    N, D = h.shape
    M = adj2.shape[0]
    D_pad = _round_up(D, 128)
    T, N_pad, M_pad, need = _plan_streaming(N, M, D_pad, vmem_cap, force_tile)
    m_tiles = M_pad // T
    n_tiles = N_pad // T
    steps_per_layer = m_tiles + n_tiles
    steps = (n_layers - 1) * steps_per_layer

    # Zero padding is numerically inert for these matmuls.
    h_p = jnp.zeros((N_pad, D_pad), jnp.bfloat16).at[:N, :D].set(h.astype(jnp.bfloat16))
    adj1_p = jnp.zeros((N_pad, M_pad), jnp.bfloat16).at[:N, :M].set(adj1.astype(jnp.bfloat16))
    adj2_p = jnp.zeros((M_pad, N_pad), jnp.bfloat16).at[:M, :N].set(adj2.astype(jnp.bfloat16))

    def adj2_map(s):
        sl = s % steps_per_layer
        return (jnp.where(sl < m_tiles, sl, 0), 0)

    def adj1_map(s):
        sl = s % steps_per_layer
        return (jnp.where(sl >= m_tiles, sl - m_tiles, 0), 0)

    out = pl.pallas_call(
        _make_streaming_kernel(n_layers, T, m_tiles, n_tiles),
        out_shape=jax.ShapeDtypeStruct((N_pad, D_pad), jnp.float32),
        grid_spec=pltpu.PrefetchScalarGridSpec(
            num_scalar_prefetch=0,
            grid=(steps,),
            in_specs=[
                pl.BlockSpec(memory_space=pltpu.MemorySpace.SMEM),     # w [L]
                pl.BlockSpec((N_pad, D_pad), lambda s: (0, 0)),        # h (resident)
                pl.BlockSpec((T, N_pad), adj2_map),                    # adj2 row tiles
                pl.BlockSpec((T, M_pad), adj1_map),                    # adj1 row tiles
            ],
            out_specs=pl.BlockSpec((N_pad, D_pad), lambda s: (0, 0)),  # accumulator
            scratch_shapes=[
                pltpu.VMEM((N_pad, D_pad), jnp.bfloat16),              # x
                pltpu.VMEM((M_pad, D_pad), jnp.bfloat16),              # t
            ],
        ),
        compiler_params=pltpu.CompilerParams(
            dimension_semantics=("arbitrary",),     # layer schedule is sequential
            vmem_limit_bytes=_vmem_limit_bytes(need, vmem_cap),
        ),
    )(w, h_p, adj2_p, adj1_p)
    return out[:N, :D]


def hcf_propagate_all(branches, n_layers, *, force_streaming=False, force_tile=None):
    """branches: list of (adj1 [N,M], adj2 [M,N], h [N,D], layer_weights [L])."""
    vmem_cap = _vmem_capacity_bytes()
    budget = int(0.75 * vmem_cap)        # gen-aware residency budget
    outputs = [None] * len(branches)
    resident_groups = {}
    for idx, (adj1, adj2, h, lw) in enumerate(branches):
        N, D = h.shape
        M = adj2.shape[0]
        assert adj1.shape == (N, M) and adj2.shape == (M, N), "adjacency shape mismatch"
        # softmax of the tiny (L,) weight vector is parameter glue -> plain JAX
        w = jax.nn.softmax(lw.astype(jnp.float32))
        if n_layers <= 1:                # only the layer-0 term is used
            outputs[idx] = w[0] * h.astype(jnp.float32)
            continue
        N_pad, M_pad, D_pad = (_round_up(N, 128), _round_up(M, 128),
                               _round_up(D, 128))
        if (not force_streaming
                and _resident_need_bytes(N_pad, M_pad, D_pad) <= budget):
            key = (N_pad, M_pad, D_pad)
            resident_groups.setdefault(key, []).append((idx, adj1, adj2, h, w, N, D))
        else:
            outputs[idx] = _propagate_streaming(adj1, adj2, h, w, n_layers,
                                                vmem_cap, force_tile)
    for (N_pad, M_pad, D_pad), items in resident_groups.items():
        outs = _propagate_resident(items, n_layers, N_pad, M_pad, D_pad, vmem_cap)
        for (idx, *_), o in zip(items, outs):
            outputs[idx] = o
    return outputs


def hcf_forward(params, adj_u1, adj_u2, adj_i1, adj_i2,
                adj_m1, adj_m2, adj_a1, adj_a2, n_layers):
    branches = [
        (adj_u1, adj_u2, params["user_emb"], params["u_weights"]),
        (adj_i1, adj_i2, params["item_emb"], params["i_weights"]),
        (adj_m1, adj_m2, params["mashup_tag_emb"], params["m_weights"]),
        (adj_a1, adj_a2, params["api_tag_emb"], params["a_weights"]),
    ]
    u_emb, i_emb, m_emb, a_emb = hcf_propagate_all(branches, n_layers)
    return u_emb, i_emb, m_emb, a_emb


# --------------------------------------------------------------------------
# Reference + demo
# --------------------------------------------------------------------------

def _reference_propagate(adj1, adj2, h, layer_weights, n_layers):
    """Pure-JAX f32 reference mirroring the PyTorch forward (only the first
    n_layers embeddings are summed, i.e. n_layers-1 propagation rounds)."""
    emb = [h]
    for _ in range(n_layers - 1):
        t = adj2 @ emb[-1]
        emb.append(adj1 @ t)
    stacked = jnp.stack(emb, axis=1)                     # [N, L, D]
    w = jax.nn.softmax(layer_weights)
    return jnp.sum(stacked * w.reshape(1, n_layers, 1), axis=1)


def _rand_adj(key, rows, cols):
    """Deterministic dense 'sparse-like' row-normalized adjacency."""
    k1, k2 = jax.random.split(key)
    vals = jax.random.uniform(k1, (rows, cols), dtype=jnp.float32)
    mask = (jax.random.uniform(k2, (rows, cols)) < 0.3).astype(jnp.float32)
    a = vals * mask
    deg = jnp.maximum(a.sum(axis=1, keepdims=True), 1e-6)
    return a / deg


if __name__ == "__main__":
    # Small, shape-consistent synthetic configuration.
    n_users, n_items = 32, 24
    n_mashup_tag, n_api_tag = 16, 40
    embedding_dim = 128
    n_layers = 3

    key = jax.random.PRNGKey(0)
    ks = jax.random.split(key, 16)

    # Synthetic "pretrained" embedding tables (the module loads them from .h5).
    params = {
        "user_emb":       jax.random.normal(ks[0], (n_users, embedding_dim), jnp.float32),
        "item_emb":       jax.random.normal(ks[1], (n_items, embedding_dim), jnp.float32),
        "mashup_tag_emb": jax.random.normal(ks[2], (n_mashup_tag, embedding_dim), jnp.float32),
        "api_tag_emb":    jax.random.normal(ks[3], (n_api_tag, embedding_dim), jnp.float32),
        # nn.Parameter(torch.ones(n_layers)) for each branch
        "u_weights": jnp.ones((n_layers,), jnp.float32),
        "i_weights": jnp.ones((n_layers,), jnp.float32),
        "m_weights": jnp.ones((n_layers,), jnp.float32),
        "a_weights": jnp.ones((n_layers,), jnp.float32),
    }

    # Bipartite-style propagation matrices: adj2 : [M, N], adj1 : [N, M]
    adj_u2 = _rand_adj(ks[4],  n_items, n_users)
    adj_u1 = _rand_adj(ks[5],  n_users, n_items)
    adj_i2 = _rand_adj(ks[6],  n_users, n_items)
    adj_i1 = _rand_adj(ks[7],  n_items, n_users)
    adj_m2 = _rand_adj(ks[8],  n_mashup_tag, n_mashup_tag)
    adj_m1 = _rand_adj(ks[9],  n_mashup_tag, n_mashup_tag)
    adj_a2 = _rand_adj(ks[10], n_api_tag, n_api_tag)
    adj_a1 = _rand_adj(ks[11], n_api_tag, n_api_tag)

    # Fused resident path (all four branches in one "parallel"-grid kernel).
    u_emb, i_emb, m_emb, a_emb = hcf_forward(
        params, adj_u1, adj_u2, adj_i1, adj_i2,
        adj_m1, adj_m2, adj_a1, adj_a2, n_layers)
    jax.block_until_ready((u_emb, i_emb, m_emb, a_emb))

    refs = (
        _reference_propagate(adj_u1, adj_u2, params["user_emb"],       params["u_weights"], n_layers),
        _reference_propagate(adj_i1, adj_i2, params["item_emb"],       params["i_weights"], n_layers),
        _reference_propagate(adj_m1, adj_m2, params["mashup_tag_emb"], params["m_weights"], n_layers),
        _reference_propagate(adj_a1, adj_a2, params["api_tag_emb"],    params["a_weights"], n_layers),
    )
    # Tolerance reflects bf16 adjacency storage with f32 MXU accumulation.
    for got, ref in zip((u_emb, i_emb, m_emb, a_emb), refs):
        assert got.shape == ref.shape, "shape mismatch vs reference"
        assert jnp.allclose(got, ref, atol=2e-2, rtol=2e-2), "mismatch vs reference"

    # Also exercise the streaming (tiled) fallback path with multiple
    # adjacency row tiles (forced small tile) and validate it too.
    Ns, Ms = 200, 300
    adj1_s = _rand_adj(ks[12], Ns, Ms)
    adj2_s = _rand_adj(ks[13], Ms, Ns)
    h_s = jax.random.normal(ks[14], (Ns, embedding_dim), jnp.float32)
    lw_s = jnp.ones((n_layers,), jnp.float32)
    got_s = hcf_propagate_all([(adj1_s, adj2_s, h_s, lw_s)], n_layers,
                              force_streaming=True, force_tile=128)[0]
    jax.block_until_ready(got_s)
    ref_s = _reference_propagate(adj1_s, adj2_s, h_s, lw_s, n_layers)
    assert got_s.shape == ref_s.shape, "streaming path shape mismatch"
    assert jnp.allclose(got_s, ref_s, atol=2e-2, rtol=2e-2), "streaming path mismatch"

    print("KERNEL_OK")
</pallas_src>

<mosaic_0001>
module attributes {stable_mosaic.version = 11 : i64} {
  func.func @kernel(%arg0: i32, %arg1: memref<12xf32, #tpu.memory_space<smem>>, %arg2: memref<1x128x128xf32, #tpu.memory_space<vmem>>, %arg3: memref<1x128x128xbf16, #tpu.memory_space<vmem>>, %arg4: memref<1x128x128xbf16, #tpu.memory_space<vmem>>, %arg5: memref<1x128x128xf32, #tpu.memory_space<vmem>>, %arg6: memref<128x128xbf16, #tpu.memory_space<vmem>>) attributes {dimension_semantics = [#tpu.dimension_semantics<parallel>], iteration_bounds = array<i64: 4>, scalar_prefetch = 0 : i64, scratch_operands = 1 : i64, tpu.core_type = #tpu.core_type<tc>, window_params = [{transform_indices = @transform_0, window_bounds = array<i64: 12>}, {transform_indices = @transform_1, window_bounds = array<i64: 1, 128, 128>}, {transform_indices = @transform_2, window_bounds = array<i64: 1, 128, 128>}, {transform_indices = @transform_3, window_bounds = array<i64: 1, 128, 128>}, {transform_indices = @transform_4, window_bounds = array<i64: 1, 128, 128>}]} {
    %c0 = arith.constant 0 : index
    %c0_0 = arith.constant 0 : index
    %c0_1 = arith.constant 0 : index
    %0 = vector.load %arg2[%c0, %c0_0, %c0_1] : memref<1x128x128xf32, #tpu.memory_space<vmem>>, vector<1x128x128xf32>
    %1 = vector.shape_cast %0 : vector<1x128x128xf32> to vector<128x128xf32>
    %2 = arith.truncf %1 : vector<128x128xf32> to vector<128x128xbf16>
    %c0_2 = arith.constant 0 : index
    %c0_3 = arith.constant 0 : index
    %3 = vector.load %arg6[%c0_2, %c0_3] : memref<128x128xbf16, #tpu.memory_space<vmem>>, vector<128x128xbf16>
    tpu.vector_store %arg6[%c0_2, %c0_3], %2 {strides = array<i32>} : memref<128x128xbf16, #tpu.memory_space<vmem>>, vector<128x128xbf16>,
    %c3_i32 = arith.constant 3 : i32
    %4 = arith.muli %arg0, %c3_i32 : i32
    %5 = arith.index_cast %4 : i32 to index
    %6 = memref.load %arg1[%5] : memref<12xf32, #tpu.memory_space<smem>>
    %7 = vector.broadcast %6 : f32 to vector<128x128xf32>
    %8 = arith.mulf %7, %1 : vector<128x128xf32>
    %c0_4 = arith.constant 0 : index
    %c0_5 = arith.constant 0 : index
    %c0_6 = arith.constant 0 : index
    %9 = vector.load %arg5[%c0_4, %c0_5, %c0_6] : memref<1x128x128xf32, #tpu.memory_space<vmem>>, vector<1x128x128xf32>
    %10 = vector.shape_cast %9 : vector<1x128x128xf32> to vector<128x128xf32>
    %11 = vector.shape_cast %8 : vector<128x128xf32> to vector<1x128x128xf32>
    tpu.vector_store %arg5[%c0_4, %c0_5, %c0_6], %11 {strides = array<i32>} : memref<1x128x128xf32, #tpu.memory_space<vmem>>, vector<1x128x128xf32>,
    %c0_7 = arith.constant 0 : index
    %c0_8 = arith.constant 0 : index
    %c0_9 = arith.constant 0 : index
    %12 = vector.load %arg3[%c0_7, %c0_8, %c0_9] : memref<1x128x128xbf16, #tpu.memory_space<vmem>>, vector<1x128x128xbf16>
    %13 = vector.shape_cast %12 : vector<1x128x128xbf16> to vector<128x128xbf16>
    %c0_10 = arith.constant 0 : index
    %c0_11 = arith.constant 0 : index
    %14 = vector.load %arg6[%c0_10, %c0_11] : memref<128x128xbf16, #tpu.memory_space<vmem>>, vector<128x128xbf16>
    %cst = arith.constant dense<0.000000e+00> : vector<128x128xf32>
    %15 = tpu.matmul %13, %14, %cst {dimension_numbers = #tpu.dot_dimension_numbers<[1], [0], [0], [1], [0, 0, 1, 1], [], []>} : vector<128x128xbf16>, vector<128x128xbf16>, vector<128x128xf32> -> vector<128x128xf32>
    %c0_12 = arith.constant 0 : index
    %c0_13 = arith.constant 0 : index
    %c0_14 = arith.constant 0 : index
    %16 = vector.load %arg4[%c0_12, %c0_13, %c0_14] : memref<1x128x128xbf16, #tpu.memory_space<vmem>>, vector<1x128x128xbf16>
    %17 = vector.shape_cast %16 : vector<1x128x128xbf16> to vector<128x128xbf16>
    %18 = arith.truncf %15 : vector<128x128xf32> to vector<128x128xbf16>
    %cst_15 = arith.constant dense<0.000000e+00> : vector<128x128xf32>
    %19 = tpu.matmul %17, %18, %cst_15 {dimension_numbers = #tpu.dot_dimension_numbers<[1], [0], [0], [1], [0, 0, 1, 1], [], []>} : vector<128x128xbf16>, vector<128x128xbf16>, vector<128x128xf32> -> vector<128x128xf32>
    %20 = arith.truncf %19 : vector<128x128xf32> to vector<128x128xbf16>
    %c0_16 = arith.constant 0 : index
    %c0_17 = arith.constant 0 : index
    %21 = vector.load %arg6[%c0_16, %c0_17] : memref<128x128xbf16, #tpu.memory_space<vmem>>, vector<128x128xbf16>
    tpu.vector_store %arg6[%c0_16, %c0_17], %20 {strides = array<i32>} : memref<128x128xbf16, #tpu.memory_space<vmem>>, vector<128x128xbf16>,
    %c0_18 = arith.constant 0 : index
    %c0_19 = arith.constant 0 : index
    %c0_20 = arith.constant 0 : index
    %22 = vector.load %arg5[%c0_18, %c0_19, %c0_20] : memref<1x128x128xf32, #tpu.memory_space<vmem>>, vector<1x128x128xf32>
    %23 = vector.shape_cast %22 : vector<1x128x128xf32> to vector<128x128xf32>
    %c3_i32_21 = arith.constant 3 : i32
    %24 = arith.muli %arg0, %c3_i32_21 : i32
    %c1_i32 = arith.constant 1 : i32
    %25 = arith.addi %24, %c1_i32 : i32
    %26 = arith.index_cast %25 : i32 to index
    %27 = memref.load %arg1[%26] : memref<12xf32, #tpu.memory_space<smem>>
    %28 = vector.broadcast %27 : f32 to vector<128x128xf32>
    %29 = arith.mulf %28, %19 : vector<128x128xf32>
    %30 = arith.addf %23, %29 : vector<128x128xf32>
    %c0_22 = arith.constant 0 : index
    %c0_23 = arith.constant 0 : index
    %c0_24 = arith.constant 0 : index
    %31 = vector.load %arg5[%c0_22, %c0_23, %c0_24] : memref<1x128x128xf32, #tpu.memory_space<vmem>>, vector<1x128x128xf32>
    %32 = vector.shape_cast %31 : vector<1x128x128xf32> to vector<128x128xf32>
    %33 = vector.shape_cast %30 : vector<128x128xf32> to vector<1x128x128xf32>
    tpu.vector_store %arg5[%c0_22, %c0_23, %c0_24], %33 {strides = array<i32>} : memref<1x128x128xf32, #tpu.memory_space<vmem>>, vector<1x128x128xf32>,
    %c0_25 = arith.constant 0 : index
    %c0_26 = arith.constant 0 : index
    %c0_27 = arith.constant 0 : index
    %34 = vector.load %arg3[%c0_25, %c0_26, %c0_27] : memref<1x128x128xbf16, #tpu.memory_space<vmem>>, vector<1x128x128xbf16>
    %35 = vector.shape_cast %34 : vector<1x128x128xbf16> to vector<128x128xbf16>
    %c0_28 = arith.constant 0 : index
    %c0_29 = arith.constant 0 : index
    %36 = vector.load %arg6[%c0_28, %c0_29] : memref<128x128xbf16, #tpu.memory_space<vmem>>, vector<128x128xbf16>
    %cst_30 = arith.constant dense<0.000000e+00> : vector<128x128xf32>
    %37 = tpu.matmul %35, %36, %cst_30 {dimension_numbers = #tpu.dot_dimension_numbers<[1], [0], [0], [1], [0, 0, 1, 1], [], []>} : vector<128x128xbf16>, vector<128x128xbf16>, vector<128x128xf32> -> vector<128x128xf32>
    %c0_31 = arith.constant 0 : index
    %c0_32 = arith.constant 0 : index
    %c0_33 = arith.constant 0 : index
    %38 = vector.load %arg4[%c0_31, %c0_32, %c0_33] : memref<1x128x128xbf16, #tpu.memory_space<vmem>>, vector<1x128x128xbf16>
    %39 = vector.shape_cast %38 : vector<1x128x128xbf16> to vector<128x128xbf16>
    %40 = arith.truncf %37 : vector<128x128xf32> to vector<128x128xbf16>
    %cst_34 = arith.constant dense<0.000000e+00> : vector<128x128xf32>
    %41 = tpu.matmul %39, %40, %cst_34 {dimension_numbers = #tpu.dot_dimension_numbers<[1], [0], [0], [1], [0, 0, 1, 1], [], []>} : vector<128x128xbf16>, vector<128x128xbf16>, vector<128x128xf32> -> vector<128x128xf32>
    %42 = arith.truncf %41 : vector<128x128xf32> to vector<128x128xbf16>
    %c0_35 = arith.constant 0 : index
    %c0_36 = arith.constant 0 : index
    %43 = vector.load %arg6[%c0_35, %c0_36] : memref<128x128xbf16, #tpu.memory_space<vmem>>, vector<128x128xbf16>
    tpu.vector_store %arg6[%c0_35, %c0_36], %42 {strides = array<i32>} : memref<128x128xbf16, #tpu.memory_space<vmem>>, vector<128x128xbf16>,
    %c0_37 = arith.constant 0 : index
    %c0_38 = arith.constant 0 : index
    %c0_39 = arith.constant 0 : index
    %44 = vector.load %arg5[%c0_37, %c0_38, %c0_39] : memref<1x128x128xf32, #tpu.memory_space<vmem>>, vector<1x128x128xf32>
    %45 = vector.shape_cast %44 : vector<1x128x128xf32> to vector<128x128xf32>
    %c3_i32_40 = arith.constant 3 : i32
    %46 = arith.muli %arg0, %c3_i32_40 : i32
    %c2_i32 = arith.constant 2 : i32
    %47 = arith.addi %46, %c2_i32 : i32
    %48 = arith.index_cast %47 : i32 to index
    %49 = memref.load %arg1[%48] : memref<12xf32, #tpu.memory_space<smem>>
    %50 = vector.broadcast %49 : f32 to vector<128x128xf32>
    %51 = arith.mulf %50, %41 : vector<128x128xf32>
    %52 = arith.addf %45, %51 : vector<128x128xf32>
    %c0_41 = arith.constant 0 : index
    %c0_42 = arith.constant 0 : index
    %c0_43 = arith.constant 0 : index
    %53 = vector.load %arg5[%c0_41, %c0_42, %c0_43] : memref<1x128x128xf32, #tpu.memory_space<vmem>>, vector<1x128x128xf32>
    %54 = vector.shape_cast %53 : vector<1x128x128xf32> to vector<128x128xf32>
    %55 = vector.shape_cast %52 : vector<128x128xf32> to vector<1x128x128xf32>
    tpu.vector_store %arg5[%c0_41, %c0_42, %c0_43], %55 {strides = array<i32>} : memref<1x128x128xf32, #tpu.memory_space<vmem>>, vector<1x128x128xf32>,
    return
  }
  func.func @transform_0(%arg0: i32) -> i32 {
    %c0_i32 = arith.constant 0 : i32
    %c0_i32_0 = arith.constant 0 : i32
    return %c0_i32 : i32
  }
  func.func @transform_1(%arg0: i32) -> (i32, i32, i32) {
    %c0_i32 = arith.constant 0 : i32
    %c0_i32_0 = arith.constant 0 : i32
    %c0_i32_1 = arith.constant 0 : i32
    return %arg0, %c0_i32, %c0_i32_0 : i32, i32, i32
  }
  func.func @transform_2(%arg0: i32) -> (i32, i32, i32) {
    %c0_i32 = arith.constant 0 : i32
    %c0_i32_0 = arith.constant 0 : i32
    %c0_i32_1 = arith.constant 0 : i32
    return %arg0, %c0_i32, %c0_i32_0 : i32, i32, i32
  }
  func.func @transform_3(%arg0: i32) -> (i32, i32, i32) {
    %c0_i32 = arith.constant 0 : i32
    %c0_i32_0 = arith.constant 0 : i32
    %c0_i32_1 = arith.constant 0 : i32
    return %arg0, %c0_i32, %c0_i32_0 : i32, i32, i32
  }
  func.func @transform_4(%arg0: i32) -> (i32, i32, i32) {
    %c0_i32 = arith.constant 0 : i32
    %c0_i32_0 = arith.constant 0 : i32
    %c0_i32_1 = arith.constant 0 : i32
    return %arg0, %c0_i32, %c0_i32_0 : i32, i32, i32
  }
}

</mosaic_0001>

<bundles_post_ra>
// kernel: tpu_custom_call.1
= control target key start
LH: loop header
LB: loop body
LE: loop exit
PB: predicated region body
PF: predicated region fallthrough
CT: control target
= control target key end

     0   :  { %s3015_s0 = inlined_call_operand.hbm [shape: f32[12], index: 0, kind: input, shape index: {}]   ;;  %s3016_s1 = inlined_call_operand.hbm [shape: f32[4,128,128], index: 1, kind: input, shape index: {}]   ;;  %s3017_s2 = inlined_call_operand.hbm [shape: bf16[4,128,128], index: 2, kind: input, shape index: {}]   ;;  %s3018_s3 = inlined_call_operand.hbm [shape: bf16[4,128,128], index: 3, kind: input, shape index: {}]   ;;  %s3019_s4 = inlined_call_operand.hbm [shape: f32[4,128,128], index: 4, kind: output, shape index: {}]  }
   0x1   :  { %3028 = sst [smem:[#allocation18_spill]] %s3017_s2 }
   0x2   :  { %9 = vsyncpa [#allocation6], 0 }
   0x3   :  { %10 = vsyncpa [#allocation4], 0 }
   0x4   :  { %12 = vsyncpa [#allocation4 + $0x1], 0 }
   0x5   :  { %13 = vsyncpa [#allocation9], 0 }
   0x6   :  { %15 = vsyncpa [#allocation9 + $0x1], 0 }
   0x7   :  { %16 = vsyncpa [#allocation5], 0 }
   0x8   :  { %18 = vsyncpa [#allocation5 + $0x1], 0  ;;  %s2492_s15 = smov 0   ;;  %s2494_s16 = smov 0  }
   0x9   :  { %s2496_s17 = smov 0   ;;  %s2498_s18 = smov 0  }
   0xa LB: > { %3029 = sst [smem:[#allocation16_spill]] %s2450_s17  ;;  %s2513_s19 = sadd.s32 1, %s2454_s18   ;;  %s2454_s18 = sphi %s2498_s18, %s3051_s18   ;;  %s2450_s17 = sphi %s2496_s17, %s3048_s17   ;;  %s2446_s16 = sphi %s2494_s16, %s3050_s16   ;;  %s2442_s15 = sphi %s2492_s15, %s3049_s15  }
   0xb   : > { %s52_s20 = sadd.s32 1, %s2450_s17  ;;  %s49_s21 = ssub.s32 %s2454_s18, %s2513_s19 }
   0xc   : > { %p3020_p0 = scmp.ne.s32.totalorder %s2450_s17, %s2446_s16  ;;  %p50_p1 = scmp.eq.s32.totalorder %s49_s21, 0 }
   0xd   : > { %p60_p2 = scmp.eq.s32.totalorder %s2454_s18, 0  ;;  %p2197_p3 = scmp.lt.s32.totalorder %s2454_s18, 4 }
   0xe   : > { %s2523_s22 = scalar_select %p50_p1, %s2450_s17, %s52_s20  }
   0xf   : > { %p61_p4 = por %p60_p2, %p3020_p0  ;;  %s2529_s23 = sand.u32 1, %s2450_s17  }
  0x10   : > { %3030 = sst [smem:[#allocation17_spill]] %s2523_s22  ;;  %s197_s24 = sand.u32 1, %s2454_s18  }
  0x11   : > { %s1668_s25 = sshll.u32 %s2529_s23, 6  ;;  %p2533_p5 = pnand %p2197_p3, %p61_p4 }
  0x12   : > { %s1782_s27 = sshll.u32 %s2454_s18, 10  ;;  %s3032_s2 = sld [smem:[#allocation18_spill]] }
  0x13   : > { %s201_s5 = scalar_lea.vmem [#allocation8], %s1668_s25  ;;  %s2549_s7 = scalar_lea.sflag [#allocation9], %s197_s24 }
  0x14   : > { %s208_s6 = sshll.u32 %s201_s5, 4  ;;  %p2555_p7 = pneg %p2533_p5  ;;  %s2547_s6 = int_to_ptr.vmem [resolvable:$true] %s208_s6 }
  0x18   : > { %s2543_s30 = scalar_lea.hbm %s3032_s2, %s1782_s27  ;;  %s2292_s12 = scalar_lea.hbm %s3032_s2, 4096 }
  0x19   : > { %s2287_s8 = scalar_lea.hbm %s2543_s30, 1024  ;;  %p2293_p10 = scmp.lt.s32.totalorder %s2543_s30, %s3032_s2 }
  0x1a   : > { %p2288_p6 = scmp.ne.s32.totalorder %s2543_s30, %s2287_s8  ;;  %p2294_p11 = scmp.lt.s32.totalorder %s2292_s12, %s2287_s8 }
  0x1c   : > { %p2290_p8 = pnand %p2555_p7, %p2288_p6  ;;  %p2295_p12 = por %p2294_p11, %p2293_p10 }
  0x1e   : > { %p2291_p9 = pneg %p2290_p8 }
  0x20   : > { %p2296_p13 = pnand %p2295_p12, %p2291_p9 }
  0x22   : > { %2299 = shalt.err (!%p2296_p13)
}
  0x23   : > { %s2300_s20 = scalar_lea.vmem %s2547_s6, 1024  ;;  %s2456_s21 = smov [#allocation8]  }
  0x24   : > { %p2301_p1 = scmp.ne.s32.totalorder %s2547_s6, %s2300_s20  ;;  %s2305_s24 = sshll.u32 %s2456_s21, 4  ;;  %s2306_s24 = int_to_ptr.vmem [resolvable:$false] %s2305_s24 }
  0x25   : > { %s2307_s28 = scalar_lea.vmem %s2306_s24, 2048  ;;  %p2308_p4 = scmp.lt.s32.totalorder %s2547_s6, %s2306_s24 }
  0x26   : > { %p2303_p2 = pnand %p2301_p1, %p2555_p7  ;;  %p2309_p6 = scmp.lt.s32.totalorder %s2307_s28, %s2300_s20 }
  0x28   : > { %p2304_p3 = pneg %p2303_p2  ;;  %p2310_p8 = por %p2309_p6, %p2308_p4 }
  0x2a   : > { %p2311_p0 = pnand %p2310_p8, %p2304_p3 }
  0x2c   : > { %2314 = shalt.err (!%p2311_p0)
}
  0x2d   : > { %s3021_s29 = smov 64   ;;  %s3022_s5 = smov 4  }
  0x2e   : > { %2188 = dma.hbm_to_vmem [thread:$0]  (!%p2533_p5), %s2543_s30, 1024, %s2547_s6, %s2549_s7, %s3021_s29, %s3021_s29, %s3022_s5  }
  0x2f   : > { %s2586_s11 = scalar_lea.hbm %s3018_s3, %s1782_s27  ;;  %s2589_s12 = sadd.s32 4294967295, %s2454_s18  }
  0x30   : > { %s1661_s13 = sadd.s32 4294967294, %s2454_s18   ;;  %p65_p0 = scmp.ne.s32.totalorder %s2446_s16, %s2442_s15 }
  0x31   : > { %p3024_p9 = scmp.eq.s32.totalorder %s2589_s12, 0  ;;  %p141_p10 = scmp.eq.s32.totalorder %s2589_s12, 3 }
  0x32   : > { %p147_p11 = scmp.eq.s32.totalorder %s1661_s13, 3  ;;  %p1662_p13 = scmp.ge.s32.totalorder %s2454_s18, 1 }
  0x33   : > { %p2598_p12 = por %p3024_p9, %p65_p0  ;;  %p3035_p1 = scmp.ne.s32.totalorder %s2450_s17, %s2446_s16 }
  0x34   : > { %p2610_p3 = por %p147_p11, %p65_p0  ;;  %p154_p4 = scmp.lt.s32.totalorder %s2454_s18, 5 }
  0x35   : > { %s3034_s30 = scalar_select %p2598_p12, 1, 0 }
  0x36   : > { %p2606_p2 = por %p141_p10, %p3035_p1  ;;  %s222_s14 = scalar_lea.vmem [#allocation10], %s1668_s25 }
  0x37   : > { %s3037_s6 = scalar_select %p2610_p3, 1, 0 }
  0x38   : > { %s3036_s27 = scalar_select %p2606_p2, 1, 0 }
  0x39   : > { %s229_s20 = sshll.u32 %s222_s14, 4  ;;  %p2617_p6 = pnand %p1662_p13, %p154_p4  ;;  %s2634_s20 = int_to_ptr.vmem [resolvable:$true] %s229_s20 }
  0x3a   : > { %s1665_s24 = sshll.u32 %s2529_s23, 7  ;;  %s1781_s28 = sshll.u32 %s2454_s18, 11 }
  0x3b   : > { %s3038_s21 = scalar_select %p2617_p6, 1, 0 }
  0x3c   : > { %p2178_p8 = pneg %p2617_p6  ;;  %s2628_s13 = scalar_lea.hbm %s3016_s1, %s1781_s28 }
  0x3d   : > { %s180_s25 = scalar_lea.vmem [#allocation7], %s1665_s24  ;;  %s2459_s29 = smov [#allocation3]  }
  0x3e   : > { %s187_s14 = sshll.u32 %s180_s25, 4  ;;  %p2179_p0 = pnand %p2178_p8, %p3024_p9  ;;  %s2632_s14 = int_to_ptr.vmem [resolvable:$true] %s187_s14 }
  0x3f   : > { %s177_s22 = scalar_lea.sflag [#allocation4], %s2529_s23  ;;  %s2326_s8 = scalar_lea.hbm %s2628_s13, 2048 }
  0x40   : > { %2181 = dma.hbm_to_smem (!%p2179_p0), %s3015_s0, 16, %s2459_s29, [#allocation6]  }
  0x41   : > { %p2327_p10 = scmp.ne.s32.totalorder %s2628_s13, %s2326_s8  ;;  %s2331_s10 = scalar_lea.hbm %s3016_s1, 8192 }
  0x42   : > { %p2332_p1 = scmp.lt.s32.totalorder %s2628_s13, %s3016_s1  ;;  %p2333_p4 = scmp.lt.s32.totalorder %s2331_s10, %s2326_s8 }
  0x43   : > { %p2329_p11 = pnand %p2327_p10, %p2555_p7 }
  0x44   : > { %p2334_p8 = por %p2333_p4, %p2332_p1 }
  0x45   : > { %p2330_p13 = pneg %p2329_p11 }
  0x47   : > { %p2335_p9 = pnand %p2334_p8, %p2330_p13 }
  0x49   : > { %2338 = shalt.err (!%p2335_p9)
}
  0x4a   : > { %s2339_s2 = scalar_lea.vmem %s2632_s14, 2048  ;;  %s2460_s29 = smov [#allocation7]  }
  0x4b   : > { %p2340_p0 = scmp.ne.s32.totalorder %s2632_s14, %s2339_s2  ;;  %s2344_s5 = sshll.u32 %s2460_s29, 4  ;;  %s2345_s5 = int_to_ptr.vmem [resolvable:$false] %s2344_s5 }
  0x4c   : > { %s2346_s28 = scalar_lea.vmem %s2345_s5, 4096  ;;  %p2347_p3 = scmp.lt.s32.totalorder %s2632_s14, %s2345_s5 }
  0x4d   : > { %p2342_p10 = pnand %p2340_p0, %p2555_p7  ;;  %p2348_p2 = scmp.lt.s32.totalorder %s2346_s28, %s2339_s2 }
  0x4f   : > { %p2343_p11 = pneg %p2342_p10  ;;  %p2349_p12 = por %p2348_p2, %p2347_p3 }
  0x51   : > { %p2350_p6 = pnand %p2349_p12, %p2343_p11 }
  0x53   : > { %2353 = shalt.err (!%p2350_p6)
}
  0x54   : > { %s2461_s17 = smov 128   ;;  %s2462_s8 = smov 8  }
  0x55   : > { %2185 = dma.hbm_to_vmem [thread:$0]  (!%p2533_p5), %s2628_s13, 2048, %s2632_s14, %s177_s22, %s2461_s17, %s2461_s17, %s2462_s8  }
  0x56   : > { %s2354_s24 = scalar_lea.hbm %s2586_s11, 1024  ;;  %s2359_s2 = scalar_lea.hbm %s3018_s3, 4096 }
  0x57   : > { %p2355_p9 = scmp.ne.s32.totalorder %s2586_s11, %s2354_s24  ;;  %p2360_p12 = scmp.lt.s32.totalorder %s2586_s11, %s3018_s3 }
  0x58   : > { %p2361_p3 = scmp.lt.s32.totalorder %s2359_s2, %s2354_s24 }
  0x59   : > { %p2357_p13 = pnand %p2355_p9, %p2555_p7 }
  0x5a   : > { %p2362_p6 = por %p2361_p3, %p2360_p12 }
  0x5b   : > { %p2358_p2 = pneg %p2357_p13 }
  0x5d   : > { %p2363_p1 = pnand %p2362_p6, %p2358_p2 }
  0x5f   : > { %2366 = shalt.err (!%p2363_p1)
}
  0x60   : > { %s2367_s22 = scalar_lea.vmem %s2634_s20, 1024  ;;  %s2463_s23 = smov [#allocation10]  }
  0x61   : > { %p2368_p4 = scmp.ne.s32.totalorder %s2634_s20, %s2367_s22  ;;  %s2372_s13 = sshll.u32 %s2463_s23, 4  ;;  %s2373_s13 = int_to_ptr.vmem [resolvable:$false] %s2372_s13 }
  0x62   : > { %s2374_s14 = scalar_lea.vmem %s2373_s13, 2048  ;;  %p2375_p10 = scmp.lt.s32.totalorder %s2634_s20, %s2373_s13 }
  0x63   : > { %p2370_p8 = pnand %p2368_p4, %p2555_p7  ;;  %p2376_p11 = scmp.lt.s32.totalorder %s2374_s14, %s2367_s22 }
  0x65   : > { %p2371_p0 = pneg %p2370_p8  ;;  %p2377_p9 = por %p2376_p11, %p2375_p10 }
  0x67   : > { %p2378_p13 = pnand %p2377_p9, %p2371_p0 }
  0x69   : > { %2381 = shalt.err (!%p2378_p13)
}
  0x6a   : > { %s3039_s28 = smov 4   ;;  %s3040_s17 = smov 64  }
  0x6b   : > { %2191 = dma.hbm_to_vmem [thread:$0]  (!%p2533_p5), %s2586_s11, 1024, %s2634_s20, %s2549_s7, %s3040_s17, %s3040_s17, %s3039_s28  }
  0x6c   : > { %p3041_p7 = scmp.ne.s32.totalorder %s3038_s21, 0 }
  0x6d   : > { %p3042_p2 = scmp.eq.s32.totalorder (!%p3041_p7), %s2589_s12, 0 }
  0x6e   : > { %241 = sbr.rel (%p3041_p7) target bundleno = 1182 (0x49e), region = 36 }
  0x73   : > { %2425 = dma.done.wait (%p3042_p2), [#allocation6], 16   ;;  %p3043_p12 = pmov %p3042_p2 }
  0x74   : > { %s2693_s9 = sand.u32 1, %s2446_s16   ;;  %p3044_p5 = scmp.ne.s32.totalorder %s3034_s30, 0 }
  0x75   : > { %2427 = vsyncadd (%p3043_p12), [#allocation6], 4294967280  ;;  %s1676_s26 = sshll.u32 %s2693_s9, 7  ;;  %s248_s8 = scalar_lea.sflag [#allocation4], %s2693_s9 }
  0x76   : > { %s2699_s7 = scalar_lea.vmem [#allocation7], %s1676_s26 }
  0x77   : > { %2429 = dma.done.wait (%p3044_p5), %s248_s8, 2048  }
  0x78   : > { %2431 = vsyncadd (%p3044_p5), %s248_s8, 4294965248  ;;  %s256_s11 = sand.u32 1, %s2589_s12   ;;  %s1677_s20 = sshll.u32 %s2693_s9, 6 }
  0x79   : > { %s257_s21 = scalar_lea.sflag [#allocation9], %s256_s11  ;;  %s2707_s24 = scalar_lea.vmem [#allocation8], %s1677_s20 }
  0x7a   : > { %2433 = dma.done.wait (%p3044_p5), %s257_s21, 2048  }
  0x7b   : > { %2435 = vsyncadd (%p3044_p5), %s257_s21, 4294965248  ;;  %s2713_s10 = scalar_lea.vmem [#allocation10], %s1677_s20 }
  0x7c   : > { %274 = sfence }
  0x7d   : > { %v2716_v0 = vld [vmem:[%s2699_s7 + $0x70] sm:$0xff]  ;;  %v2719_v1 = vld [vmem:[%s2699_s7 + $0x78] sm:$0xff]  ;;  %v2722_v2 = vld [vmem:[%s2699_s7 + $0x60] sm:$0xff]  ;;  %s402_s30 = smul.u32 3, %s2589_s12  ;;  %s2890_s23 = scalar_lea.vmem [#allocation11], %s1676_s26 }
  0x7e   : > { %v1871_v3 = vpack.c.bf16 %v2719_v1, %v2716_v0  ;;  %v2727_v4 = vld [vmem:[%s2699_s7 + $0x68] sm:$0xff]  ;;  %v2730_v5 = vld [vmem:[%s2699_s7 + $0x50] sm:$0xff]  ;;  %v2733_v6 = vld [vmem:[%s2699_s7 + $0x58] sm:$0xff]  ;;  %s1832_s13 = sshll.u32 %s2589_s12, 11  ;;  %s1533_s14 = sshll.u32 %s2890_s23, 4  ;;  %s2971_s14 = int_to_ptr.vmem [resolvable:$true] %s1533_s14 }
  0x7f   : > { %v1866_v7 = vpack.c.bf16 %v2727_v4, %v2722_v2  ;;  %v1861_v8 = vpack.c.bf16 %v2733_v6, %v2730_v5  ;;  %v2740_v9 = vld [vmem:[%s2699_s7 + $0x40] sm:$0xff]  ;;  %v2743_v10 = vld [vmem:[%s2699_s7 + $0x48] sm:$0xff]  ;;  %v2746_v11 = vld [vmem:[%s2699_s7 + $0x30] sm:$0xff]  ;;  %s927_s25 = sadd.s32 1, %s402_s30  ;;  %s403_s2 = sld [smem:[#allocation3 + %s402_s30]] }
  0x80   : > { %1959 = vst [vmem:[#allocation2 + $0x38] sm:$0xff] %v1871_v3   ;;  %v1856_v12 = vpack.c.bf16 %v2743_v10, %v2740_v9  ;;  %v2751_v13 = vld [vmem:[%s2699_s7 + $0x38] sm:$0xff]  ;;  %v2754_v14 = vld [vmem:[%s2699_s7 + $0x20] sm:$0xff]  ;;  %v2757_v15 = vld [vmem:[%s2699_s7 + $0x28] sm:$0xff]  ;;  %s928_s29 = sld [smem:[#allocation3 + %s927_s25]]  ;;  %s1468_s5 = sadd.s32 2, %s402_s30 }
  0x81   : > { %1958 = vst [vmem:[#allocation2 + $0x30] sm:$0xff] %v1866_v7   ;;  %1957 = vst [vmem:[#allocation2 + $0x28] sm:$0xff] %v1861_v8   ;;  %v1851_v16 = vpack.c.bf16 %v2751_v13, %v2746_v11  ;;  %v1846_v17 = vpack.c.bf16 %v2757_v15, %v2754_v14  ;;  %v2764_v18 = vld [vmem:[%s2699_s7 + $0x10] sm:$0xff]  ;;  %v2767_v19 = vld [vmem:[%s2699_s7 + $0x18] sm:$0xff]  ;;  %s1469_s22 = sld [smem:[#allocation3 + %s1468_s5]]  ;;  %s2969_s26 = scalar_lea.hbm %s3019_s4, %s1832_s13 }
  0x82   : > { %v2770_v20 = vld [vmem:[%s2699_s7] sm:$0xff]  ;;  %1956 = vst [vmem:[#allocation2 + $0x20] sm:$0xff] %v1856_v12   ;;  %v1841_v21 = vpack.c.bf16 %v2767_v19, %v2764_v18  ;;  %v2775_v22 = vld [vmem:[%s2699_s7 + $0x8] sm:$0xff]  ;;  %v2249_v34 = vld [vmem:[%s2707_s24 + $0x10] sm:$0xff]   ;;  %s1520_s12 = scalar_lea.sflag [#allocation5], %s2693_s9  ;;  %s2382_s8 = scalar_lea.vmem %s2971_s14, 2048 }
  0x83   : > { %1955 = vst [vmem:[#allocation2 + $0x18] sm:$0xff] %v1851_v16   ;;  %1954 = vst [vmem:[#allocation2 + $0x10] sm:$0xff] %v1846_v17   ;;  %v1836_v23 = vpack.c.bf16 %v2775_v22, %v2770_v20  ;;  %v2247_v24 = vld [vmem:[%s2707_s24] sm:$0xff]   ;;  %v2248_v33 = vld [vmem:[%s2707_s24 + $0x8] sm:$0xff]   ;;  %p2383_p3 = scmp.ne.s32.totalorder %s2971_s14, %s2382_s8  ;;  %p3045_p6 = scmp.ne.s32.totalorder %s3036_s27, 0 }
  0x84   : > { %1953 = vst [vmem:[#allocation2 + $0x8] sm:$0xff] %v1841_v21   ;;  %2054 = vmatprep.mubr.bf16.mxu0 %v2247_v24  ;;  %v2250_v35 = vld [vmem:[%s2707_s24 + $0x18] sm:$0xff]   ;;  %v2251_v36 = vld [vmem:[%s2707_s24 + $0x20] sm:$0xff]   ;;  %v2252_v37 = vld [vmem:[%s2707_s24 + $0x28] sm:$0xff]   ;;  %s2464_s7 = smov [#allocation11]  }
  0x85   : > { %1837 = vst [vmem:[#allocation2] sm:$0xff] %v1836_v23   ;;  %v2253_v38 = vld [vmem:[%s2707_s24 + $0x30] sm:$0xff]   ;;  %v2254_v39 = vld [vmem:[%s2707_s24 + $0x38] sm:$0xff]   ;;  %v2255_v40 = vld [vmem:[%s2713_s10] sm:$0xff]   ;;  %p2384_p1 = pnand %p2383_p3, %p3045_p6  ;;  %s2386_s11 = sshll.u32 %s2464_s7, 4  ;;  %s2387_s11 = int_to_ptr.vmem [resolvable:$false] %s2386_s11 }
  0x86   : > { %2086 = vmatprep.mubr.bf16.mxu1 %v2255_v40  ;;  %v2256_v7 = vld [vmem:[%s2713_s10 + $0x8] sm:$0xff]   ;;  %v2257_v8 = vld [vmem:[%s2713_s10 + $0x10] sm:$0xff]   ;;  %v2258_v12 = vld [vmem:[%s2713_s10 + $0x18] sm:$0xff]   ;;  %s2388_s20 = scalar_lea.vmem %s2387_s11, 4096  ;;  %p2389_p8 = scmp.lt.s32.totalorder %s2971_s14, %s2387_s11 }
  0x87   : > { %v2239_v25 = vld [vmem:[#allocation2 + $0x38] sm:$0xff]   ;;  %v2259_v16 = vld [vmem:[%s2713_s10 + $0x20] sm:$0xff]   ;;  %v2260_v17 = vld [vmem:[%s2713_s10 + $0x28] sm:$0xff]   ;;  %p2385_p4 = pneg %p2384_p1  ;;  %p2390_p0 = scmp.lt.s32.totalorder %s2388_s20, %s2382_s8 }
  0x88   : > { %v2240_v26 = vld [vmem:[#allocation2 + $0x30] sm:$0xff]   ;;  %2038 = vmatprep.subr.bf16.mxu0 %v2239_v25  ;;  %v2241_v27 = vld [vmem:[#allocation2 + $0x28] sm:$0xff]   ;;  %v2262_v23 = vld [vmem:[%s2713_s10 + $0x38] sm:$0xff]  }
  0x89   : > { %2039 = vmatpush3.bf16.msra.mxu0 %v2239_v25  ;;  %v2242_v28 = vld [vmem:[#allocation2 + $0x20] sm:$0xff]   ;;  %v2261_v21 = vld [vmem:[%s2713_s10 + $0x30] sm:$0xff]   ;;  %p2391_p10 = por %p2390_p0, %p2389_p8 }
  0x8a   : > { %2040 = vmatprep.subr.bf16.mxu0 %v2240_v26  ;;  %v2243_v29 = vld [vmem:[#allocation2 + $0x18] sm:$0xff]   ;;  %v2244_v30 = vld [vmem:[#allocation2 + $0x10] sm:$0xff]   ;;  %v2271_v24 = vld [vmem:[%s2707_s24] sm:$0xff]  }
  0x8b   : > { %v2245_v31 = vld [vmem:[#allocation2 + $0x8] sm:$0xff]   ;;  %p2392_p11 = pnand %p2391_p10, %p2385_p4 }
  0x8c   : > { %v2246_v32 = vld [vmem:[#allocation2] sm:$0xff]  }
  0x8d   : > { %2041 = vmatpush3.bf16.msra.mxu0 %v2240_v26 }
  0x8e   : > { %2042 = vmatprep.subr.bf16.mxu0 %v2241_v27 }
  0x91   : > { %2043 = vmatpush3.bf16.msra.mxu0 %v2241_v27 }
  0x92   : > { %2044 = vmatprep.subr.bf16.mxu0 %v2242_v28 }
  0x95   : > { %2045 = vmatpush3.bf16.msra.mxu0 %v2242_v28 }
  0x96   : > { %2046 = vmatprep.subr.bf16.mxu0 %v2243_v29 }
  0x99   : > { %2047 = vmatpush3.bf16.msra.mxu0 %v2243_v29 }
  0x9a   : > { %2048 = vmatprep.subr.bf16.mxu0 %v2244_v30 }
  0x9d   : > { %2049 = vmatpush3.bf16.msra.mxu0 %v2244_v30 }
  0x9e   : > { %2050 = vmatprep.subr.bf16.mxu0 %v2245_v31 }
  0xa1   : > { %2051 = vmatpush3.bf16.msra.mxu0 %v2245_v31 }
  0xa2   : > { %2052 = vmatprep.subr.bf16.mxu0 %v2246_v32 }
  0xa5   : > { %2053 = vmatpush3.bf16.msra.mxu0 %v2246_v32 }
  0xa8   : > { %2055 = vmatmul.mubr.bf16.vlgmr.msra.gmra.mxu0 %v2248_v33 }
  0xa9   : > { %2058 = vmatprep.mubr.bf16.mxu0 %v2249_v34 }
  0xb0   : > { %2059 = vmatmul.mubr.bf16.gmra.mxu0 %v2250_v35 }
  0xb1   : > { %2062 = vmatprep.mubr.bf16.mxu0 %v2251_v36 }
  0xb8   : > { %2063 = vmatmul.mubr.bf16.gmra.mxu0 %v2252_v37 }
  0xb9   : > { %2066 = vmatprep.mubr.bf16.mxu0 %v2253_v38 }
  0xc0   : > { %2067 = vmatmul.mubr.bf16.gmra.mxu0 %v2254_v39 }
  0xc1   : > { %2118 = vmatprep.mubr.bf16.mxu0 %v2271_v24 }
 0x168   : > { %v2056_v41 = vpop.f32.mrf.mxu0 }
 0x16a   : > { %v599_v42 = vpop.f32.mrf.mxu0 }
 0x16c   : > { %v2057_v43 = vpop.f32.mrf.mxu0 }
 0x16d   : > { %v679_v63 = vpack.c.bf16 %v2057_v43, %v2056_v41 }
 0x16e   : > { %v602_v44 = vpop.f32.mrf.mxu0 }
 0x16f   : > { %v678_v3 = vpack.c.bf16 %v602_v44, %v599_v42 }
 0x170   : > { %v2060_v45 = vpop.f32.mrf.mxu0 }
 0x172   : > { %v615_v46 = vpop.f32.mrf.mxu0 }
 0x174   : > { %v2061_v47 = vpop.f32.mrf.mxu0 }
 0x175   : > { %v681_v61 = vpack.c.bf16 %v2061_v47, %v2060_v45 }
 0x176   : > { %v618_v48 = vpop.f32.mrf.mxu0 }
 0x177   : > { %v680_v62 = vpack.c.bf16 %v618_v48, %v615_v46 }
 0x178   : > { %v2064_v49 = vpop.f32.mrf.mxu0 }
 0x17a   : > { %v631_v50 = vpop.f32.mrf.mxu0 }
 0x17c   : > { %v2065_v51 = vpop.f32.mrf.mxu0 }
 0x17d   : > { %v683_v59 = vpack.c.bf16 %v2065_v51, %v2064_v49 }
 0x17e   : > { %v634_v52 = vpop.f32.mrf.mxu0 }
 0x17f   : > { %v682_v60 = vpack.c.bf16 %v634_v52, %v631_v50 }
 0x180   : > { %v2068_v53 = vpop.f32.mrf.mxu0 }
 0x182   : > { %v647_v54 = vpop.f32.mrf.mxu0 }
 0x184   : > { %v2069_v55 = vpop.f32.mrf.mxu0 }
 0x185   : > { %v685_v56 = vpack.c.bf16 %v2069_v55, %v2068_v53 }
 0x186   : > { %v650_v57 = vpop.f32.mrf.mxu0 }
 0x187   : > { %v684_v58 = vpack.c.bf16 %v650_v57, %v647_v54  ;;  %2070 = vmatprep.subr.bf16.mxu1 %v685_v56  ;;  %v2272_v57 = vld [vmem:[%s2707_s24 + $0x8] sm:$0xff]  }
 0x188   : > { %2071 = vmatpush3.bf16.msra.mxu1 %v685_v56 }
 0x189   : > { %2072 = vmatprep.subr.bf16.mxu1 %v684_v58 }
 0x18c   : > { %2073 = vmatpush3.bf16.msra.mxu1 %v684_v58  ;;  %v2273_v58 = vld [vmem:[%s2707_s24 + $0x10] sm:$0xff]  }
 0x18d   : > { %2074 = vmatprep.subr.bf16.mxu1 %v683_v59 }
 0x190   : > { %2075 = vmatpush3.bf16.msra.mxu1 %v683_v59  ;;  %v2274_v59 = vld [vmem:[%s2707_s24 + $0x18] sm:$0xff]  }
 0x191   : > { %2076 = vmatprep.subr.bf16.mxu1 %v682_v60 }
 0x194   : > { %2077 = vmatpush3.bf16.msra.mxu1 %v682_v60  ;;  %v2275_v60 = vld [vmem:[%s2707_s24 + $0x20] sm:$0xff]  }
 0x195   : > { %2078 = vmatprep.subr.bf16.mxu1 %v681_v61 }
 0x198   : > { %2079 = vmatpush3.bf16.msra.mxu1 %v681_v61  ;;  %v2276_v61 = vld [vmem:[%s2707_s24 + $0x28] sm:$0xff]  }
 0x199   : > { %2080 = vmatprep.subr.bf16.mxu1 %v680_v62 }
 0x19c   : > { %2081 = vmatpush3.bf16.msra.mxu1 %v680_v62  ;;  %v2277_v62 = vld [vmem:[%s2707_s24 + $0x30] sm:$0xff]  }
 0x19d   : > { %2082 = vmatprep.subr.bf16.mxu1 %v679_v63 }
 0x1a0   : > { %2083 = vmatpush3.bf16.msra.mxu1 %v679_v63  ;;  %v2278_v63 = vld [vmem:[%s2707_s24 + $0x38] sm:$0xff]  }
 0x1a1   : > { %2084 = vmatprep.subr.bf16.mxu1 %v678_v3 }
 0x1a4   : > { %2085 = vmatpush3.bf16.msra.mxu1 %v678_v3  ;;  %v2279_v3 = vld [vmem:[%s2713_s10] sm:$0xff]  }
 0x1a7   : > { %2087 = vmatmul.mubr.bf16.vlgmr.msra.gmra.mxu1 %v2256_v7 }
 0x1a8   : > { %2090 = vmatprep.mubr.bf16.mxu1 %v2257_v8 }
 0x1af   : > { %2091 = vmatmul.mubr.bf16.gmra.mxu1 %v2258_v12 }
 0x1b0   : > { %2094 = vmatprep.mubr.bf16.mxu1 %v2259_v16 }
 0x1b7   : > { %2095 = vmatmul.mubr.bf16.gmra.mxu1 %v2260_v17 }
 0x1b8   : > { %2098 = vmatprep.mubr.bf16.mxu1 %v2261_v21 }
 0x1bf   : > { %2099 = vmatmul.mubr.bf16.gmra.mxu1 %v2262_v23 }
 0x1c0   : > { %2150 = vmatprep.mubr.bf16.mxu1 %v2279_v3  ;;  %v2860_v3 = vstv %s403_s2 }
 0x267   : > { %v2796_v25 = vpop.f32.mrf.mxu1 }
 0x269   : > { %v2798_v26 = vpop.f32.mrf.mxu1 }
 0x26b   : > { %v2800_v27 = vpop.f32.mrf.mxu1 }
 0x26c   : > { %v1881_v28 = vpack.c.bf16 %v2800_v27, %v2796_v25 }
 0x26d   : > { %v2804_v29 = vpop.f32.mrf.mxu1 }
 0x26e   : > { %1960 = vst [vmem:[#allocation2 + $0x8] sm:$0xff] %v1881_v28   ;;  %v1876_v30 = vpack.c.bf16 %v2804_v29, %v2798_v26 }
 0x26f   : > { %v2808_v31 = vpop.f32.mrf.mxu1 }
 0x270   : > { %1877 = vst [vmem:[#allocation2] sm:$0xff] %v1876_v30  }
 0x271   : > { %v2810_v32 = vpop.f32.mrf.mxu1 }
 0x273   : > { %v2812_v33 = vpop.f32.mrf.mxu1 }
 0x274   : > { %v1891_v34 = vpack.c.bf16 %v2812_v33, %v2808_v31 }
 0x275   : > { %v2816_v35 = vpop.f32.mrf.mxu1  ;;  %v2269_v55 = vld [vmem:[#allocation2 + $0x8] sm:$0xff]  }
 0x276   : > { %1962 = vst [vmem:[#allocation2 + $0x18] sm:$0xff] %v1891_v34   ;;  %v1886_v36 = vpack.c.bf16 %v2816_v35, %v2810_v32 }
 0x277   : > { %v2820_v37 = vpop.f32.mrf.mxu1  ;;  %v2270_v56 = vld [vmem:[#allocation2] sm:$0xff]  }
 0x278   : > { %1961 = vst [vmem:[#allocation2 + $0x10] sm:$0xff] %v1886_v36  }
 0x279   : > { %v2822_v38 = vpop.f32.mrf.mxu1 }
 0x27b   : > { %v2824_v39 = vpop.f32.mrf.mxu1 }
 0x27c   : > { %v1901_v40 = vpack.c.bf16 %v2824_v39, %v2820_v37 }
 0x27d   : > { %v2828_v41 = vpop.f32.mrf.mxu1  ;;  %v2267_v53 = vld [vmem:[#allocation2 + $0x18] sm:$0xff]  }
 0x27e   : > { %1964 = vst [vmem:[#allocation2 + $0x28] sm:$0xff] %v1901_v40   ;;  %v1896_v42 = vpack.c.bf16 %v2828_v41, %v2822_v38 }
 0x27f   : > { %v2832_v43 = vpop.f32.mrf.mxu1  ;;  %v2268_v54 = vld [vmem:[#allocation2 + $0x10] sm:$0xff]  }
 0x280   : > { %1963 = vst [vmem:[#allocation2 + $0x20] sm:$0xff] %v1896_v42  }
 0x281   : > { %v2834_v44 = vpop.f32.mrf.mxu1 }
 0x283   : > { %v2836_v45 = vpop.f32.mrf.mxu1 }
 0x284   : > { %v1911_v46 = vpack.c.bf16 %v2836_v45, %v2832_v43 }
 0x285   : > { %v2840_v47 = vpop.f32.mrf.mxu1  ;;  %v2265_v51 = vld [vmem:[#allocation2 + $0x28] sm:$0xff]  }
 0x286   : > { %1966 = vst [vmem:[#allocation2 + $0x38] sm:$0xff] %v1911_v46   ;;  %v1906_v48 = vpack.c.bf16 %v2840_v47, %v2834_v44 }
 0x287   : > { %v2266_v52 = vld [vmem:[#allocation2 + $0x20] sm:$0xff]  }
 0x288   : > { %1965 = vst [vmem:[#allocation2 + $0x30] sm:$0xff] %v1906_v48  }
 0x28d   : > { %v2263_v49 = vld [vmem:[#allocation2 + $0x38] sm:$0xff]  }
 0x28e   : > { %2102 = vmatprep.subr.bf16.mxu0 %v2263_v49 }
 0x28f   : > { %v2264_v50 = vld [vmem:[#allocation2 + $0x30] sm:$0xff]   ;;  %2103 = vmatpush3.bf16.msra.mxu0 %v2263_v49 }
 0x290   : > { %2104 = vmatprep.subr.bf16.mxu0 %v2264_v50 }
 0x293   : > { %2105 = vmatpush3.bf16.msra.mxu0 %v2264_v50 }
 0x294   : > { %2106 = vmatprep.subr.bf16.mxu0 %v2265_v51 }
 0x297   : > { %2107 = vmatpush3.bf16.msra.mxu0 %v2265_v51 }
 0x298   : > { %2108 = vmatprep.subr.bf16.mxu0 %v2266_v52 }
 0x29b   : > { %2109 = vmatpush3.bf16.msra.mxu0 %v2266_v52 }
 0x29c   : > { %2110 = vmatprep.subr.bf16.mxu0 %v2267_v53 }
 0x29f   : > { %2111 = vmatpush3.bf16.msra.mxu0 %v2267_v53 }
 0x2a0   : > { %2112 = vmatprep.subr.bf16.mxu0 %v2268_v54 }
 0x2a3   : > { %2113 = vmatpush3.bf16.msra.mxu0 %v2268_v54 }
 0x2a4   : > { %2114 = vmatprep.subr.bf16.mxu0 %v2269_v55 }
 0x2a7   : > { %2115 = vmatpush3.bf16.msra.mxu0 %v2269_v55 }
 0x2a8   : > { %2116 = vmatprep.subr.bf16.mxu0 %v2270_v56 }
 0x2ab   : > { %2117 = vmatpush3.bf16.msra.mxu0 %v2270_v56 }
 0x2ae   : > { %2119 = vmatmul.mubr.bf16.vlgmr.msra.gmra.mxu0 %v2272_v57  ;;  %v2280_v57 = vld [vmem:[%s2713_s10 + $0x8] sm:$0xff]  }
 0x2af   : > { %2122 = vmatprep.mubr.bf16.mxu0 %v2273_v58  ;;  %v2281_v58 = vld [vmem:[%s2713_s10 + $0x10] sm:$0xff]  }
 0x2b6   : > { %2123 = vmatmul.mubr.bf16.gmra.mxu0 %v2274_v59  ;;  %v2282_v59 = vld [vmem:[%s2713_s10 + $0x18] sm:$0xff]  }
 0x2b7   : > { %2126 = vmatprep.mubr.bf16.mxu0 %v2275_v60  ;;  %v2283_v60 = vld [vmem:[%s2713_s10 + $0x20] sm:$0xff]  }
 0x2be   : > { %2127 = vmatmul.mubr.bf16.gmra.mxu0 %v2276_v61  ;;  %v2284_v61 = vld [vmem:[%s2713_s10 + $0x28] sm:$0xff]  }
 0x2bf   : > { %2130 = vmatprep.mubr.bf16.mxu0 %v2277_v62  ;;  %v2285_v62 = vld [vmem:[%s2713_s10 + $0x30] sm:$0xff]  }
 0x2c6   : > { %2131 = vmatmul.mubr.bf16.gmra.mxu0 %v2278_v63  ;;  %v2286_v63 = vld [vmem:[%s2713_s10 + $0x38] sm:$0xff]  }
 0x36e   : > { %v2120_v7 = vpop.f32.mrf.mxu0 }
 0x370   : > { %v1140_v8 = vpop.f32.mrf.mxu0 }
 0x372   : > { %v2121_v12 = vpop.f32.mrf.mxu0 }
 0x373   : > { %v1220_v55 = vpack.c.bf16 %v2121_v12, %v2120_v7  ;;  %v2862_v7 = vstv %s928_s29 }
 0x374   : > { %v1143_v16 = vpop.f32.mrf.mxu0  ;;  %v932_v12 = vmul.f32 %v2796_v25, %v2862_v7  ;;  %v406_v25 = vmul.f32 %v2860_v3, %v2775_v22 }
 0x375   : > { %v1219_v56 = vpack.c.bf16 %v1143_v16, %v1140_v8  ;;  %v407_v8 = vmul.f32 %v2860_v3, %v2764_v18  ;;  %v2868_v16 = vstv %s1469_s22 }
 0x376   : > { %v2124_v17 = vpop.f32.mrf.mxu0 }
 0x377   : > { %v948_v18 = vadd.f32 %v932_v12, %v407_v8  ;;  %v940_v12 = vmul.f32 %v2820_v37, %v2862_v7 }
 0x378   : > { %v1156_v21 = vpop.f32.mrf.mxu0 }
 0x37a   : > { %v2125_v23 = vpop.f32.mrf.mxu0 }
 0x37b   : > { %v1222_v53 = vpack.c.bf16 %v2125_v23, %v2124_v17  ;;  %v405_v17 = vmul.f32 %v2860_v3, %v2770_v20  ;;  %v408_v23 = vmul.f32 %v2860_v3, %v2767_v19  ;;  %v931_v20 = vmul.f32 %v2862_v7, %v2804_v29 }
 0x37c   : > { %v1159_v24 = vpop.f32.mrf.mxu0  ;;  %v411_v19 = vmul.f32 %v2860_v3, %v2746_v11 }
 0x37d   : > { %v1221_v54 = vpack.c.bf16 %v1159_v24, %v1156_v21  ;;  %v930_v21 = vmul.f32 %v2862_v7, %v2798_v26  ;;  %v933_v24 = vmul.f32 %v2800_v27, %v2862_v7 }
 0x37e   : > { %v2128_v28 = vpop.f32.mrf.mxu0 }
 0x380   : > { %v1172_v30 = vpop.f32.mrf.mxu0 }
 0x382   : > { %v2129_v34 = vpop.f32.mrf.mxu0 }
 0x383   : > { %v1224_v51 = vpack.c.bf16 %v2129_v34, %v2128_v28 }
 0x384   : > { %v1175_v36 = vpop.f32.mrf.mxu0 }
 0x385   : > { %v1223_v52 = vpack.c.bf16 %v1175_v36, %v1172_v30  ;;  %v946_v36 = vadd.f32 %v930_v21, %v405_v17 }
 0x386   : > { %v2132_v40 = vpop.f32.mrf.mxu0 }
 0x388   : > { %v1188_v42 = vpop.f32.mrf.mxu0 }
 0x38a   : > { %v2133_v46 = vpop.f32.mrf.mxu0 }
 0x38b   : > { %v1226_v48 = vpack.c.bf16 %v2133_v46, %v2132_v40  ;;  %v936_v46 = vmul.f32 %v2808_v31, %v2862_v7 }
 0x38c   : > { %v1191_v49 = vpop.f32.mrf.mxu0 }
 0x38d   : > { %v1225_v50 = vpack.c.bf16 %v1191_v49, %v1188_v42  ;;  %2134 = vmatprep.subr.bf16.mxu1 %v1226_v48  ;;  %v949_v42 = vadd.f32 %v933_v24, %v408_v23  ;;  %v947_v49 = vadd.f32 %v931_v20, %v406_v25  ;;  %v413_v23 = vmul.f32 %v2860_v3, %v2740_v9 }
 0x38e   : > { %2135 = vmatpush3.bf16.msra.mxu1 %v1226_v48  ;;  %v941_v25 = vmul.f32 %v2824_v39, %v2862_v7 }
 0x38f   : > { %2136 = vmatprep.subr.bf16.mxu1 %v1225_v50 }
 0x392   : > { %2137 = vmatpush3.bf16.msra.mxu1 %v1225_v50  ;;  %v409_v50 = vmul.f32 %v2860_v3, %v2754_v14 }
 0x393   : > { %2138 = vmatprep.subr.bf16.mxu1 %v1224_v51 }
 0x396   : > { %2139 = vmatpush3.bf16.msra.mxu1 %v1224_v51  ;;  %v934_v51 = vmul.f32 %v2862_v7, %v2810_v32 }
 0x397   : > { %2140 = vmatprep.subr.bf16.mxu1 %v1223_v52 }
 0x39a   : > { %2141 = vmatpush3.bf16.msra.mxu1 %v1223_v52 }
 0x39b   : > { %2142 = vmatprep.subr.bf16.mxu1 %v1222_v53 }
 0x39e   : > { %2143 = vmatpush3.bf16.msra.mxu1 %v1222_v53 }
 0x39f   : > { %2144 = vmatprep.subr.bf16.mxu1 %v1221_v54 }
 0x3a2   : > { %2145 = vmatpush3.bf16.msra.mxu1 %v1221_v54  ;;  %v412_v54 = vmul.f32 %v2860_v3, %v2751_v13 }
 0x3a3   : > { %2146 = vmatprep.subr.bf16.mxu1 %v1220_v55 }
 0x3a6   : > { %2147 = vmatpush3.bf16.msra.mxu1 %v1220_v55  ;;  %v937_v55 = vmul.f32 %v2812_v33, %v2862_v7 }
 0x3a7   : > { %2148 = vmatprep.subr.bf16.mxu1 %v1219_v56 }
 0x3aa   : > { %2149 = vmatpush3.bf16.msra.mxu1 %v1219_v56 }
 0x3ad   : > { %2151 = vmatmul.mubr.bf16.vlgmr.msra.gmra.mxu1 %v2280_v57  ;;  %v952_v57 = vadd.f32 %v936_v46, %v411_v19 }
 0x3ae   : > { %2154 = vmatprep.mubr.bf16.mxu1 %v2281_v58  ;;  %v410_v58 = vmul.f32 %v2860_v3, %v2757_v15 }
 0x3b5   : > { %2155 = vmatmul.mubr.bf16.gmra.mxu1 %v2282_v59  ;;  %v935_v59 = vmul.f32 %v2862_v7, %v2816_v35 }
 0x3b6   : > { %2158 = vmatprep.mubr.bf16.mxu1 %v2283_v60 }
 0x3b7   : > { %v951_v21 = vadd.f32 %v935_v59, %v410_v58 }
 0x3bd   : > { %2159 = vmatmul.mubr.bf16.gmra.mxu1 %v2284_v61  ;;  %v950_v61 = vadd.f32 %v934_v51, %v409_v50 }
 0x3be   : > { %2162 = vmatprep.mubr.bf16.mxu1 %v2285_v62  ;;  %v953_v62 = vadd.f32 %v937_v55, %v412_v54  ;;  %v418_v55 = vmul.f32 %v2860_v3, %v2727_v4 }
 0x3c5   : > { %2163 = vmatmul.mubr.bf16.gmra.mxu1 %v2286_v63  ;;  %v415_v63 = vmul.f32 %v2860_v3, %v2730_v5 }
 0x46d   : > { %v2152_v28 = vpop.f32.mrf.mxu1 }
 0x46e   : > { %v1473_v30 = vmul.f32 %v2152_v28, %v2868_v16 }
 0x46f   : > { %v1309_v34 = vpop.f32.mrf.mxu1 }
 0x470   : > { %v1489_v26 = vadd.f32 %v1473_v30, %v948_v18  ;;  %v1471_v40 = vmul.f32 %v2868_v16, %v1309_v34  ;;  %v416_v30 = vmul.f32 %v2860_v3, %v2733_v6 }
 0x471   : > { %v2153_v27 = vpop.f32.mrf.mxu1 }
 0x472   : > { %1505 = vst [vmem:[%s2890_s23 + $0x10] sm:$0xff] %v1489_v26  ;;  %v1487_v22 = vadd.f32 %v1471_v40, %v946_v36  ;;  %v1921_v29 = vpack.c.bf16 %v2153_v27, %v2152_v28  ;;  %v1474_v48 = vmul.f32 %v2153_v27, %v2868_v16  ;;  %v938_v28 = vmul.f32 %v2862_v7, %v2822_v38 }
 0x473   : > { %v1312_v11 = vpop.f32.mrf.mxu1  ;;  %v414_v36 = vmul.f32 %v2860_v3, %v2743_v10  ;;  %v939_v26 = vmul.f32 %v2862_v7, %v2828_v41  ;;  %v957_v19 = vadd.f32 %v941_v25, %v416_v30  ;;  %v419_v27 = vmul.f32 %v2860_v3, %v2716_v0 }
 0x474   : > { %1503 = vst [vmem:[%s2890_s23] sm:$0xff] %v1487_v22  ;;  %1967 = vst [vmem:[#allocation2 + $0x8] sm:$0xff] %v1921_v29   ;;  %v1490_v31 = vadd.f32 %v1474_v48, %v949_v42  ;;  %v1916_v52 = vpack.c.bf16 %v1312_v11, %v1309_v34  ;;  %v1472_v53 = vmul.f32 %v2868_v16, %v1312_v11 }
 0x475   : > { %v2156_v56 = vpop.f32.mrf.mxu1  ;;  %v956_v34 = vadd.f32 %v940_v12, %v415_v63  ;;  %v954_v42 = vadd.f32 %v938_v28, %v413_v23  ;;  %v944_v22 = vmul.f32 %v2832_v43, %v2862_v7  ;;  %v955_v48 = vadd.f32 %v939_v26, %v414_v36 }
 0x476   : > { %1506 = vst [vmem:[%s2890_s23 + $0x18] sm:$0xff] %v1490_v31  ;;  %1917 = vst [vmem:[#allocation2] sm:$0xff] %v1916_v52   ;;  %v1488_v14 = vadd.f32 %v1472_v53, %v947_v49  ;;  %v1477_v32 = vmul.f32 %v2156_v56, %v2868_v16  ;;  %v417_v49 = vmul.f32 %v2860_v3, %v2722_v2 }
 0x477   : > { %v1325_v60 = vpop.f32.mrf.mxu1  ;;  %v942_v11 = vmul.f32 %v2862_v7, %v2834_v44  ;;  %v420_v31 = vmul.f32 %v2860_v3, %v2719_v1  ;;  %v960_v53 = vadd.f32 %v944_v22, %v419_v27  ;;  %v945_v2 = vmul.f32 %v2836_v45, %v2862_v7 }
 0x478   : > { %1504 = vst [vmem:[%s2890_s23 + $0x8] sm:$0xff] %v1488_v14  ;;  %v1493_v13 = vadd.f32 %v1477_v32, %v952_v57  ;;  %v1475_v33 = vmul.f32 %v2868_v16, %v1325_v60  ;;  %v943_v1 = vmul.f32 %v2862_v7, %v2840_v47 }
 0x479   : > { %v2157_v8 = vpop.f32.mrf.mxu1  ;;  %v958_v57 = vadd.f32 %v942_v11, %v417_v49  ;;  %v961_v58 = vadd.f32 %v945_v2, %v420_v31 }
 0x47a   : > { %1509 = vst [vmem:[%s2890_s23 + $0x30] sm:$0xff] %v1493_v13  ;;  %v1491_v15 = vadd.f32 %v1475_v33, %v950_v61  ;;  %v1931_v17 = vpack.c.bf16 %v2157_v8, %v2156_v56  ;;  %v1478_v35 = vmul.f32 %v2157_v8, %v2868_v16  ;;  %v959_v3 = vadd.f32 %v943_v1, %v418_v55 }
 0x47b   : > { %v1328_v24 = vpop.f32.mrf.mxu1 }
 0x47c   : > { %1507 = vst [vmem:[%s2890_s23 + $0x20] sm:$0xff] %v1491_v15  ;;  %1969 = vst [vmem:[#allocation2 + $0x18] sm:$0xff] %v1931_v17   ;;  %v1494_v5 = vadd.f32 %v1478_v35, %v953_v62  ;;  %v1926_v18 = vpack.c.bf16 %v1328_v24, %v1325_v60  ;;  %v1476_v37 = vmul.f32 %v2868_v16, %v1328_v24 }
 0x47d   : > { %v2160_v20 = vpop.f32.mrf.mxu1 }
 0x47e   : > { %1510 = vst [vmem:[%s2890_s23 + $0x38] sm:$0xff] %v1494_v5  ;;  %1968 = vst [vmem:[#allocation2 + $0x10] sm:$0xff] %v1926_v18   ;;  %v1492_v9 = vadd.f32 %v1476_v37, %v951_v21  ;;  %v1481_v38 = vmul.f32 %v2160_v20, %v2868_v16 }
 0x47f   : > { %v1341_v40 = vpop.f32.mrf.mxu1 }
 0x480   : > { %1508 = vst [vmem:[%s2890_s23 + $0x28] sm:$0xff] %v1492_v9  ;;  %v1497_v6 = vadd.f32 %v1481_v38, %v956_v34  ;;  %v1479_v39 = vmul.f32 %v2868_v16, %v1341_v40 }
 0x481   : > { %v2161_v46 = vpop.f32.mrf.mxu1 }
 0x482   : > { %1513 = vst [vmem:[%s2890_s23 + $0x50] sm:$0xff] %v1497_v6  ;;  %v1495_v10 = vadd.f32 %v1479_v39, %v954_v42  ;;  %v1941_v29 = vpack.c.bf16 %v2161_v46, %v2160_v20  ;;  %v1482_v41 = vmul.f32 %v2161_v46, %v2868_v16 }
 0x483   : > { %v1344_v50 = vpop.f32.mrf.mxu1 }
 0x484   : > { %1511 = vst [vmem:[%s2890_s23 + $0x40] sm:$0xff] %v1495_v10  ;;  %1971 = vst [vmem:[#allocation2 + $0x28] sm:$0xff] %v1941_v29   ;;  %v1498_v0 = vadd.f32 %v1482_v41, %v957_v19  ;;  %v1936_v51 = vpack.c.bf16 %v1344_v50, %v1341_v40  ;;  %v1480_v43 = vmul.f32 %v2868_v16, %v1344_v50 }
 0x485   : > { %v2164_v52 = vpop.f32.mrf.mxu1 }
 0x486   : > { %1514 = vst [vmem:[%s2890_s23 + $0x58] sm:$0xff] %v1498_v0  ;;  %1970 = vst [vmem:[#allocation2 + $0x20] sm:$0xff] %v1936_v51   ;;  %v1496_v44 = vadd.f32 %v1480_v43, %v955_v48  ;;  %v1485_v54 = vmul.f32 %v2164_v52, %v2868_v16 }
 0x487   : > { %v1357_v56 = vpop.f32.mrf.mxu1 }
 0x488   : > { %1512 = vst [vmem:[%s2890_s23 + $0x48] sm:$0xff] %v1496_v44  ;;  %v1501_v14 = vadd.f32 %v1485_v54, %v960_v53  ;;  %v1483_v45 = vmul.f32 %v2868_v16, %v1357_v56 }
 0x489   : > { %v2165_v32 = vpop.f32.mrf.mxu1 }
 0x48a   : > { %1517 = vst [vmem:[%s2890_s23 + $0x70] sm:$0xff] %v1501_v14  ;;  %v1499_v59 = vadd.f32 %v1483_v45, %v958_v57  ;;  %v1951_v60 = vpack.c.bf16 %v2165_v32, %v2164_v52  ;;  %v1486_v61 = vmul.f32 %v2165_v32, %v2868_v16 }
 0x48b   : > { %v1360_v4 = vpop.f32.mrf.mxu1 }
 0x48c   : > { %1515 = vst [vmem:[%s2890_s23 + $0x60] sm:$0xff] %v1499_v59  ;;  %1973 = vst [vmem:[#allocation2 + $0x38] sm:$0xff] %v1951_v60   ;;  %v1502_v47 = vadd.f32 %v1486_v61, %v961_v58  ;;  %v1946_v7 = vpack.c.bf16 %v1360_v4, %v1357_v56  ;;  %v1484_v13 = vmul.f32 %v2868_v16, %v1360_v4 }
 0x48e   : > { %1518 = vst [vmem:[%s2890_s23 + $0x78] sm:$0xff] %v1502_v47  ;;  %1972 = vst [vmem:[#allocation2 + $0x30] sm:$0xff] %v1946_v7   ;;  %v1500_v33 = vadd.f32 %v1484_v13, %v959_v3 }
 0x490   : > { %1516 = vst [vmem:[%s2890_s23 + $0x68] sm:$0xff] %v1500_v33 }
 0x491   : > { %2395 = shalt.err (!%p2392_p11)
}
 0x492   : > { %s2396_s21 = scalar_lea.hbm %s2969_s26, 2048  ;;  %s2400_s30 = scalar_lea.hbm %s3019_s4, 8192 }
 0x493   : > { %p2397_p9 = scmp.ne.s32.totalorder %s2969_s26, %s2396_s21  ;;  %p2401_p2 = scmp.lt.s32.totalorder %s2969_s26, %s3019_s4 }
 0x494   : > { %p2402_p12 = scmp.lt.s32.totalorder %s2400_s30, %s2396_s21 }
 0x495   : > { %p2398_p13 = pnand %p2397_p9, %p3045_p6 }
 0x496   : > { %p2403_p5 = por %p2402_p12, %p2401_p2 }
 0x497   : > { %p2399_p7 = pneg %p2398_p13 }
 0x499   : > { %p2404_p3 = pnand %p2403_p5, %p2399_p7 }
 0x49b   : > { %2407 = shalt.err (!%p2404_p3)
}
 0x49c   : > { %s2465_s29 = smov 128   ;;  %s2466_s5 = smov 8  }
 0x49d   : > { %2176 = dma.vmem_to_hbm [thread:$0]  (%p3045_p6), %s2971_s14, 2048, %s2969_s26, %s1520_s12, %s2465_s29, %s2465_s29, %s2466_s5  }
 0x49e PF: > { %p2199_p1 = scmp.ge.s32.totalorder %s2454_s18, 2  ;;  %s1548_s22 = sand.u32 1, %s2442_s15  }
 0x49f   : > { %p3046_p4 = scmp.ne.s32.totalorder %s3037_s6, 0  ;;  %s1549_s23 = scalar_lea.sflag [#allocation5], %s1548_s22 }
 0x4a1   : > { %p2193_p8 = pnand %p2199_p1, %p3046_p4 }
 0x4a3   : > { %p2194_p0 = pneg %p2193_p8 }
 0x4a5   : > { %2437 = dma.done.wait (%p2194_p0), %s1549_s23, 2048  }
 0x4a6   : > { %2439 = vsyncadd (%p2194_p0), %s1549_s23, 4294965248  ;;  %s3047_s13 = sld [smem:[#allocation16_spill]]  ;;  %p21_p10 = scmp.ge.s32.totalorder %s2513_s19, 6  }
 0x4a7   : > { %s3048_s17 = sld [smem:[#allocation17_spill]]  ;;  %s3049_s15 = smov %s2446_s16 }
 0x4a8   : > { %s3051_s18 = smov %s2513_s19  ;;  %23 = sbr.rel (!%p21_p10) target bundleno = 10 (0xa), region = 110 }
 0x4ac   : > { %s3050_s16 = smov %s3047_s13 }
 0x4ad   :  { %1554 = vsyncpa [#allocation4], 1 }
 0x4ae   :  { %1556 = vsyncpa [#allocation4 + $0x1], 1 }
 0x4af   :  { %1557 = vsyncpa [#allocation9], 1 }
 0x4b0   :  { %1559 = vsyncpa [#allocation9 + $0x1], 1 }
 0x4b1   :  { %1560 = vsyncpa [#allocation5], 1 }
 0x4b2   :  { %1562 = vsyncpa [#allocation5 + $0x1], 1 }
 0x4b3   :  { %1563 = vsyncpa [#allocation6], 1 }
 0x4b4   :  { %1565 = vsyncpa [#allocation6 + $0x1], 1 }

</bundles_post_ra>
